<compile_context>
chip_gen: v7x
topology: tpu7x:2x2x1
jax: 0.10.0
libtpu: 0.0.40
codegen_flags: <defaults>
</compile_context>

<pallas_src>
import jax
import jax.numpy as jnp
from jax.experimental import pallas as pl
from jax.experimental.pallas import tpu as pltpu

HIDDEN = 500        # fc1/fc2 -> 500, fc3: 500 -> 1 (hard-coded in the module)
INPUT_SIZE = 500    # must equal 500 for the residual broadcast to be legal
BATCH = 1           # PyTorch broadcast (2B,500)+(B,500) requires B == 1
LANE = 128

D_PAD = ((INPUT_SIZE + LANE - 1) // LANE) * LANE   # 512
H_PAD = ((HIDDEN + LANE - 1) // LANE) * LANE       # 512


def simnet_kernel(x_ref, res_ref, w12_ref, b12_ref, w3_ref, b3_ref, out_ref):
    """Fused forward.
    x_ref   : (2B, D_PAD)     bf16   stacked [rela1; rela2], zero-padded lanes
    res_ref : (B,  H_PAD)     f32    (rela1 + rela2) / 2, zero-padded lanes
    w12_ref : (D_PAD, 2*H_PAD) bf16  [fc1.W | fc2.W], zero-padded rows/cols
    b12_ref : (1, 2*H_PAD)    f32    [fc1.b | fc2.b], zero-padded lanes
    w3_ref  : (1, H_PAD)      f32    fc3.W lane-dense, zero-padded lanes
    b3_ref  : (1, 1)          f32
    out_ref : (2B, 1)         f32
    """
    x = x_ref[...]                                                    # bf16
    # One MXU pass for the whole hidden layer (fc1 and fc2 fused).
    z = jnp.dot(x, w12_ref[...], preferred_element_type=jnp.float32)  # (2B, 2H_PAD) f32
    z = z + b12_ref[...]

    h1 = jnp.tanh(z[:, :H_PAD])                                       # fc1 branch
    h2 = pl.reciprocal(1.0 + jnp.exp(-z[:, H_PAD:]), approx=False)    # sigmoid, fc2 branch

    # Padded lanes: h1 = tanh(0) = 0  =>  h1*h2 = 0; res padded lanes are 0.
    y = h1 * h2 + res_ref[...]                                        # (2B,H_PAD)+(B,H_PAD) bcast (B==1)

    # fc3 as VPU multiply + lane reduction (w3 padded lanes are 0).
    out = jnp.sum(y * w3_ref[...], axis=-1, keepdims=True) + b3_ref[...]
    out_ref[...] = out.astype(out_ref.dtype)


def pack_params(params):
    """One-time packing of module parameters into kernel layout."""
    w1, b1, w2, b2, w3, b3 = params
    D, H = w1.shape
    assert (D, H) == (INPUT_SIZE, HIDDEN)

    w12 = jnp.zeros((D_PAD, 2 * H_PAD), jnp.float32)
    w12 = w12.at[:D, :H].set(w1).at[:D, H_PAD:H_PAD + H].set(w2)
    b12 = jnp.zeros((1, 2 * H_PAD), jnp.float32)
    b12 = b12.at[:, :H].set(b1.reshape(1, H)).at[:, H_PAD:H_PAD + H].set(b2.reshape(1, H))
    w3p = jnp.zeros((1, H_PAD), jnp.float32).at[:, :H].set(w3.reshape(1, H))
    b3p = b3.reshape(1, 1).astype(jnp.float32)

    return (w12.astype(jnp.bfloat16), b12, w3p, b3p)


@jax.jit
def similarity_encoder_forward(rela1, rela2, packed):
    w12, b12, w3p, b3p = packed
    B, D = rela1.shape
    assert rela2.shape == (B, D)
    assert D == INPUT_SIZE == HIDDEN, "residual broadcast requires input_size == 500"
    assert B == 1, "PyTorch broadcast (2B,500)+(B,500) requires B == 1"

    # Stack the two inputs (== torch.cat along dim 0) and lane-pad to 512.
    x = jnp.concatenate([rela1, rela2], axis=0)                        # (2B, D) f32
    x = jnp.pad(x, ((0, 0), (0, D_PAD - D))).astype(jnp.bfloat16)      # (2B, D_PAD) bf16
    res = jnp.pad((rela1 + rela2) * 0.5, ((0, 0), (0, H_PAD - D)))     # (B, H_PAD) f32
    res = res.astype(jnp.float32)

    vmem = pl.BlockSpec(memory_space=pltpu.MemorySpace.VMEM)
    out = pl.pallas_call(
        simnet_kernel,
        out_shape=jax.ShapeDtypeStruct((2 * B, 1), jnp.float32),
        in_specs=[vmem] * 6,
        out_specs=vmem,
    )(x, res, w12, b12, w3p, b3p)
    return out


def init_params(key, input_size=INPUT_SIZE, hidden=HIDDEN):
    """Deterministic synthetic parameters with the module's shapes
    (weights stored as (in, out); biases as (1, out))."""
    k1, k2, k3, k4, k5, k6 = jax.random.split(key, 6)
    s1 = 1.0 / jnp.sqrt(jnp.float32(input_size))
    s3 = 1.0 / jnp.sqrt(jnp.float32(hidden))
    w1 = jax.random.uniform(k1, (input_size, hidden), jnp.float32, -s1, s1)
    b1 = jax.random.uniform(k2, (1, hidden), jnp.float32, -s1, s1)
    w2 = jax.random.uniform(k3, (input_size, hidden), jnp.float32, -s1, s1)
    b2 = jax.random.uniform(k4, (1, hidden), jnp.float32, -s1, s1)
    w3 = jax.random.uniform(k5, (hidden, 1), jnp.float32, -s3, s3)
    b3 = jax.random.uniform(k6, (1, 1), jnp.float32, -s3, s3)
    return (w1, b1, w2, b2, w3, b3)


def reference_forward(rela1, rela2, params):
    """Pure-JAX mirror of the PyTorch forward (full f32)."""
    w1, b1, w2, b2, w3, b3 = params
    x = jnp.concatenate([rela1, rela2], axis=0)
    x1 = jnp.tanh(x @ w1 + b1)
    x2 = jax.nn.sigmoid(x @ w2 + b2)
    y = x1 * x2 + (rela1 + rela2) / 2.0
    return y @ w3 + b3


def reference_forward_bf16(rela1, rela2, params):
    """Same math with the kernel's bf16 MXU inputs / f32 accumulation."""
    w1, b1, w2, b2, w3, b3 = params
    x = jnp.concatenate([rela1, rela2], axis=0).astype(jnp.bfloat16)
    z1 = jnp.dot(x, w1.astype(jnp.bfloat16), preferred_element_type=jnp.float32) + b1
    z2 = jnp.dot(x, w2.astype(jnp.bfloat16), preferred_element_type=jnp.float32) + b2
    y = jnp.tanh(z1) * jax.nn.sigmoid(z2) + (rela1 + rela2) / 2.0
    return y @ w3 + b3


if __name__ == "__main__":
    key = jax.random.PRNGKey(0)
    kp, ka, kb = jax.random.split(key, 3)
    params = init_params(kp)
    packed = pack_params(params)

    rela1 = jax.random.normal(ka, (BATCH, INPUT_SIZE), jnp.float32)
    rela2 = jax.random.normal(kb, (BATCH, INPUT_SIZE), jnp.float32)

    out = jax.block_until_ready(similarity_encoder_forward(rela1, rela2, packed))

    ref_bf16 = jax.block_until_ready(reference_forward_bf16(rela1, rela2, params))
    ref_f32 = jax.block_until_ready(reference_forward(rela1, rela2, params))

    assert out.shape == (2 * BATCH, 1), out.shape
    # Tight check against a reference using the same bf16 MXU inputs.
    assert jnp.allclose(out, ref_bf16, rtol=2e-3, atol=2e-3), (out, ref_bf16)
    # Loose sanity check against the full-f32 PyTorch-equivalent reference.
    assert jnp.allclose(out, ref_f32, rtol=5e-2, atol=5e-2), (out, ref_f32)

    print("KERNEL_OK")
</pallas_src>

<mosaic_0001>
module attributes {stable_mosaic.version = 11 : i64} {
  func.func @simnet_kernel(%arg0: memref<2x512xbf16, #tpu.memory_space<vmem>>, %arg1: memref<1x512xf32, #tpu.memory_space<vmem>>, %arg2: memref<512x1024xbf16, #tpu.memory_space<vmem>>, %arg3: memref<1x1024xf32, #tpu.memory_space<vmem>>, %arg4: memref<1x512xf32, #tpu.memory_space<vmem>>, %arg5: memref<1x1xf32, #tpu.memory_space<vmem>>, %arg6: memref<2x1xf32, #tpu.memory_space<vmem>>) attributes {dimension_semantics = [], scalar_prefetch = 0 : i64, scratch_operands = 0 : i64, tpu.core_type = #tpu.core_type<tc>} {
    %c0 = arith.constant 0 : index
    %c0_0 = arith.constant 0 : index
    %0 = vector.load %arg0[%c0, %c0_0] : memref<2x512xbf16, #tpu.memory_space<vmem>>, vector<2x512xbf16>
    %c0_1 = arith.constant 0 : index
    %c0_2 = arith.constant 0 : index
    %1 = vector.load %arg2[%c0_1, %c0_2] : memref<512x1024xbf16, #tpu.memory_space<vmem>>, vector<512x1024xbf16>
    %cst = arith.constant dense<0.000000e+00> : vector<2x1024xf32>
    %2 = tpu.matmul %0, %1, %cst {dimension_numbers = #tpu.dot_dimension_numbers<[1], [0], [0], [1], [0, 0, 1, 1], [], []>} : vector<2x512xbf16>, vector<512x1024xbf16>, vector<2x1024xf32> -> vector<2x1024xf32>
    %c0_3 = arith.constant 0 : index
    %c0_4 = arith.constant 0 : index
    %3 = vector.load %arg3[%c0_3, %c0_4] : memref<1x1024xf32, #tpu.memory_space<vmem>>, vector<1x1024xf32>
    %4 = vector.broadcast %3 : vector<1x1024xf32> to vector<2x1024xf32>
    %5 = arith.addf %2, %4 : vector<2x1024xf32>
    %6 = vector.extract_strided_slice %5 {offsets = [0, 0], sizes = [2, 512], strides = [1, 1]} : vector<2x1024xf32> to vector<2x512xf32>
    %7 = math.tanh %6 : vector<2x512xf32>
    %8 = vector.extract_strided_slice %5 {offsets = [0, 512], sizes = [2, 512], strides = [1, 1]} : vector<2x1024xf32> to vector<2x512xf32>
    %cst_5 = arith.constant 0.000000e+00 : f32
    %9 = vector.broadcast %cst_5 : f32 to vector<2x512xf32>
    %10 = arith.subf %9, %8 : vector<2x512xf32>
    %11 = math.exp %10 : vector<2x512xf32>
    %cst_6 = arith.constant 1.000000e+00 : f32
    %12 = vector.broadcast %cst_6 : f32 to vector<2x512xf32>
    %13 = arith.addf %12, %11 : vector<2x512xf32>
    %14 = tpu.reciprocal %13 : vector<2x512xf32> -> vector<2x512xf32>
    %15 = arith.mulf %7, %14 : vector<2x512xf32>
    %c0_7 = arith.constant 0 : index
    %c0_8 = arith.constant 0 : index
    %16 = vector.load %arg1[%c0_7, %c0_8] : memref<1x512xf32, #tpu.memory_space<vmem>>, vector<1x512xf32>
    %17 = vector.broadcast %16 : vector<1x512xf32> to vector<2x512xf32>
    %18 = arith.addf %15, %17 : vector<2x512xf32>
    %c0_9 = arith.constant 0 : index
    %c0_10 = arith.constant 0 : index
    %19 = vector.load %arg4[%c0_9, %c0_10] : memref<1x512xf32, #tpu.memory_space<vmem>>, vector<1x512xf32>
    %20 = vector.broadcast %19 : vector<1x512xf32> to vector<2x512xf32>
    %21 = arith.mulf %18, %20 : vector<2x512xf32>
    %cst_11 = arith.constant dense<0.000000e+00> : vector<2xf32>
    %22 = vector.multi_reduction <add>, %21, %cst_11 [1] : vector<2x512xf32> to vector<2xf32>
    %23 = vector.shape_cast %22 : vector<2xf32> to vector<2x1xf32>
    %c0_12 = arith.constant 0 : index
    %c0_13 = arith.constant 0 : index
    %24 = vector.load %arg5[%c0_12, %c0_13] : memref<1x1xf32, #tpu.memory_space<vmem>>, vector<1x1xf32>
    %25 = vector.broadcast %24 : vector<1x1xf32> to vector<2x1xf32>
    %26 = arith.addf %23, %25 : vector<2x1xf32>
    %c0_14 = arith.constant 0 : index
    %c0_15 = arith.constant 0 : index
    %27 = vector.load %arg6[%c0_14, %c0_15] : memref<2x1xf32, #tpu.memory_space<vmem>>, vector<2x1xf32>
    tpu.vector_store %arg6[%c0_14, %c0_15], %26 {strides = array<i32>} : memref<2x1xf32, #tpu.memory_space<vmem>>, vector<2x1xf32>,
    return
  }
}

</mosaic_0001>

<bundles_post_ra>
// kernel: similarity_encoder_forward.1
= control target key start
LH: loop header
LB: loop body
LE: loop exit
PB: predicated region body
PF: predicated region fallthrough
CT: control target
= control target key end

     0   :  { %s2541_s0 = inlined_call_operand.vmem [shape: bf16[2,512], index: 0, kind: input, shape index: {}]   ;;  %s2542_s1 = inlined_call_operand.vmem [shape: f32[1,512], index: 1, kind: input, shape index: {}]   ;;  %s2543_s2 = inlined_call_operand.hbm [shape: bf16[512,1024], index: 2, kind: input, shape index: {}]   ;;  %s2544_s3 = inlined_call_operand.vmem [shape: f32[1,1024], index: 3, kind: input, shape index: {}]   ;;  %s2545_s4 = inlined_call_operand.vmem [shape: f32[1,512], index: 4, kind: input, shape index: {}]   ;;  %s2546_s5 = inlined_call_operand.<no memory space> [shape: f32[1,1], index: 5, kind: input, shape index: {}]   ;;  %s2547_s6 = inlined_call_operand.vmem [shape: f32[2,1], index: 6, kind: output, shape index: {}]  }
   0x1   :  { %v11_v0 = vstv %s2546_s5 }
   0x2   :  { %12 = vst [vmem:[#allocation2] sm:$0x1] %v11_v0 }
   0x3   :  { %13 = vsyncpa [#allocation4], 0  ;;  %s2414_s23 = smov [#allocation3]   ;;  %s2390_s27 = scalar_lea.hbm %s2543_s2, 32768 }
   0x4   :  { %s23_s24 = sshll.u32 %s2414_s23, 4  ;;  %p2391_p0 = scmp.ne.s32.totalorder %s2543_s2, %s2390_s27  ;;  %s24_s24 = int_to_ptr.vmem [resolvable:$true] %s23_s24 }
   0x5   :  { %p2394_p1 = scmp.lt.u32.totalorder %s2390_s27, %s2543_s2 }
   0x7   :  { %p2396_p2 = pnand %p2394_p1, %p2391_p0 }
   0x9   :  { %2399 = shalt.err (!%p2396_p2)
}
   0xa   :  { %s2400_s5 = scalar_lea.vmem %s24_s24, 32768  ;;  %p2405_p4 = scmp.lt.s32.totalorder %s24_s24, %s24_s24 }
   0xb   :  { %p2401_p3 = scmp.ne.s32.totalorder %s24_s24, %s2400_s5  ;;  %p2406_p5 = scmp.lt.s32.totalorder %s2400_s5, %s2400_s5 }
   0xd   :  { %p2407_p6 = por %p2406_p5, %p2405_p4 }
   0xf   :  { %p2408_p7 = pnand %p2407_p6, %p2401_p3 }
  0x11   :  { %2411 = shalt.err (!%p2408_p7)
}
  0x12   :  { %s2415_s8 = smov 512   ;;  %s2416_s9 = smov 32  }
  0x13   :  { %29 = dma.hbm_to_vmem [thread:$0]  %s2543_s2, 32768, %s24_s24, [#allocation4], %s2415_s8, %s2415_s8, %s2416_s9  }
  0x14   :  { %2412 = dma.done.wait [#allocation4], 32768  }
  0x15   :  { %2413 = vsyncadd [#allocation4], 4294934528  ;;  %v40_v1 = vld [vmem:[#allocation3] sm:$0xff]  ;;  %v41_v3 = vld [vmem:[#allocation3 + $0x8] sm:$0xff]  ;;  %v298_v36 = vlaneseq  ;;  %v2417_v37 = vmov 1966171168  }
  0x16   :  { %v44_v2 = vld [vmem:[#allocation3 + $0x20] sm:$0xff]  ;;  %v45_v5 = vld [vmem:[#allocation3 + $0x28] sm:$0xff]  ;;  %v348_v38 = vunpack.c.l.s4 %v2417_v37  ;;  %vm2055_vm0 = vcmask 1041408   ;;  %vm2073_vm1 = vcmask 1024  }
  0x17   :  { %v2082_v4 = vcombine.high %v40_v1, %v44_v2  ;;  %v2081_v6 = vcombine.low %v40_v1, %v44_v2  ;;  %v48_v7 = vld [vmem:[#allocation3 + $0x40] sm:$0xff]  ;;  %v2084_v9 = vcombine.high %v41_v3, %v45_v5  ;;  %v2083_v10 = vcombine.low %v41_v3, %v45_v5  ;;  %v49_v12 = vld [vmem:[#allocation3 + $0x48] sm:$0xff] }
  0x18   :  { %v52_v8 = vld [vmem:[#allocation3 + $0x60] sm:$0xff]  ;;  %v53_v13 = vld [vmem:[#allocation3 + $0x68] sm:$0xff]  ;;  %v2468_v47 = vshrl.u32 %v298_v36, 7  ;;  %v349_v48 = vunpack.c.0.s8 %v348_v38 }
  0x19   :  { %v2090_v11 = vcombine.high %v48_v7, %v52_v8  ;;  %v56_v14 = vld [vmem:[#allocation3 + $0x80] sm:$0xff]  ;;  %1647 = vmatprep.subr.bf16.mxu0 %v2082_v4  ;;  %v2092_v15 = vcombine.high %v49_v12, %v53_v13  ;;  %v57_v17 = vld [vmem:[#allocation3 + $0x88] sm:$0xff]  ;;  %1729 = vmatprep.subr.bf16.mxu1 %v2084_v9  ;;  %v2089_v19 = vcombine.low %v48_v7, %v52_v8 }
  0x1a   :  { %v60_v16 = vld [vmem:[#allocation3 + $0xa0] sm:$0xff]  ;;  %v61_v18 = vld [vmem:[#allocation3 + $0xa8] sm:$0xff]  ;;  %1648 = vmatpush1.bf16.msra.mxu0 %v2081_v6  ;;  %1730 = vmatpush1.bf16.msra.mxu1 %v2083_v10  ;;  %v2091_v20 = vcombine.low %v49_v12, %v53_v13  ;;  %v2471_v57 = vsub.s32 %v349_v48, %v2468_v47 }
  0x1b   :  { %1649 = vmatprep.subr.bf16.mxu0 %v2090_v11  ;;  %v2098_v21 = vcombine.high %v56_v14, %v60_v16  ;;  %1731 = vmatprep.subr.bf16.mxu1 %v2092_v15  ;;  %v2100_v22 = vcombine.high %v57_v17, %v61_v18  ;;  %v64_v23 = vld [vmem:[#allocation3 + $0xc0] sm:$0xff]  ;;  %v65_v25 = vld [vmem:[#allocation3 + $0xc8] sm:$0xff]  ;;  %v2097_v27 = vcombine.low %v56_v14, %v60_v16 }
  0x1c   :  { %v68_v24 = vld [vmem:[#allocation3 + $0xe0] sm:$0xff]  ;;  %v69_v26 = vld [vmem:[#allocation3 + $0xe8] sm:$0xff]  ;;  %v2099_v28 = vcombine.low %v57_v17, %v61_v18 }
  0x1d   :  { %v2106_v29 = vcombine.high %v64_v23, %v68_v24  ;;  %v2108_v30 = vcombine.high %v65_v25, %v69_v26  ;;  %v72_v31 = vld [vmem:[#allocation3 + $0x100] sm:$0xff]  ;;  %v73_v33 = vld [vmem:[#allocation3 + $0x108] sm:$0xff]  ;;  %v2105_v35 = vcombine.low %v64_v23, %v68_v24  ;;  %v2107_v39 = vcombine.low %v65_v25, %v69_v26 }
  0x1e   :  { %1650 = vmatpush1.bf16.msra.mxu0 %v2089_v19  ;;  %1732 = vmatpush1.bf16.msra.mxu1 %v2091_v20  ;;  %v76_v32 = vld [vmem:[#allocation3 + $0x120] sm:$0xff]  ;;  %v77_v34 = vld [vmem:[#allocation3 + $0x128] sm:$0xff] }
  0x1f   :  { %1651 = vmatprep.subr.bf16.mxu0 %v2098_v21  ;;  %1733 = vmatprep.subr.bf16.mxu1 %v2100_v22  ;;  %v2114_v40 = vcombine.high %v72_v31, %v76_v32  ;;  %v2116_v41 = vcombine.high %v73_v33, %v77_v34  ;;  %v80_v42 = vld [vmem:[#allocation3 + $0x140] sm:$0xff]  ;;  %v81_v44 = vld [vmem:[#allocation3 + $0x148] sm:$0xff]  ;;  %v2113_v46 = vcombine.low %v72_v31, %v76_v32 }
  0x20   :  { %v84_v43 = vld [vmem:[#allocation3 + $0x160] sm:$0xff]  ;;  %v85_v45 = vld [vmem:[#allocation3 + $0x168] sm:$0xff]  ;;  %v2115_v49 = vcombine.low %v73_v33, %v77_v34 }
  0x21   :  { %v2122_v50 = vcombine.high %v80_v42, %v84_v43  ;;  %v2124_v51 = vcombine.high %v81_v44, %v85_v45  ;;  %v88_v52 = vld [vmem:[#allocation3 + $0x180] sm:$0xff]  ;;  %v89_v54 = vld [vmem:[#allocation3 + $0x188] sm:$0xff]  ;;  %v2121_v56 = vcombine.low %v80_v42, %v84_v43  ;;  %v2123_v58 = vcombine.low %v81_v44, %v85_v45 }
  0x22   :  { %1652 = vmatpush1.bf16.msra.mxu0 %v2097_v27  ;;  %1734 = vmatpush1.bf16.msra.mxu1 %v2099_v28  ;;  %v92_v53 = vld [vmem:[#allocation3 + $0x1a0] sm:$0xff]  ;;  %v93_v55 = vld [vmem:[#allocation3 + $0x1a8] sm:$0xff] }
  0x23   :  { %1653 = vmatprep.subr.bf16.mxu0 %v2106_v29  ;;  %1735 = vmatprep.subr.bf16.mxu1 %v2108_v30  ;;  %v2130_v59 = vcombine.high %v88_v52, %v92_v53  ;;  %v2476_v60 = vld.sshfl [vmem:[%s2541_s0] sm:$0x33 pattern:$0x75316420]  ;;  %v2132_v61 = vcombine.high %v89_v54, %v93_v55  ;;  %v97_v1 = vld [vmem:[#allocation3 + $0x1c8] sm:$0xff]  ;;  %v2129_v3 = vcombine.low %v88_v52, %v92_v53 }
  0x24   :  { %v96_v62 = vld [vmem:[#allocation3 + $0x1c0] sm:$0xff]  ;;  %v346_v0 = vcombine.high %v2476_v60, %v2476_v60  ;;  %v101_v2 = vld [vmem:[#allocation3 + $0x1e8] sm:$0xff]  ;;  %v2131_v5 = vcombine.low %v89_v54, %v93_v55 }
  0x25   :  { %v100_v63 = vld [vmem:[#allocation3 + $0x1e0] sm:$0xff]  ;;  %v2140_v7 = vcombine.high %v97_v1, %v101_v2  ;;  %v105_v10 = vld [vmem:[#allocation3 + $0x208] sm:$0xff]  ;;  %v2139_v13 = vcombine.low %v97_v1, %v101_v2 }
  0x26   :  { %1654 = vmatpush1.bf16.msra.mxu0 %v2105_v35  ;;  %1736 = vmatpush1.bf16.msra.mxu1 %v2107_v39  ;;  %v2481_v4 = vrot.slane %v346_v0, %v2471_v57  ;;  %v2138_v6 = vcombine.high %v96_v62, %v100_v63  ;;  %v104_v8 = vld [vmem:[#allocation3 + $0x200] sm:$0xff]  ;;  %v109_v11 = vld [vmem:[#allocation3 + $0x228] sm:$0xff]  ;;  %v2137_v12 = vcombine.low %v96_v62, %v100_v63 }
  0x27   :  { %1655 = vmatprep.subr.bf16.mxu0 %v2114_v40  ;;  %1737 = vmatprep.subr.bf16.mxu1 %v2116_v41  ;;  %v108_v9 = vld [vmem:[#allocation3 + $0x220] sm:$0xff]  ;;  %v2148_v15 = vcombine.high %v105_v10, %v109_v11  ;;  %v113_v18 = vld [vmem:[#allocation3 + $0x248] sm:$0xff]  ;;  %v2147_v21 = vcombine.low %v105_v10, %v109_v11 }
  0x28   :  { %1679 = vmatprep.mubr.bf16.mxu0 %v2481_v4  ;;  %1761 = vmatprep.mubr.bf16.mxu1 %v2481_v4  ;;  %v2146_v14 = vcombine.high %v104_v8, %v108_v9  ;;  %v112_v16 = vld [vmem:[#allocation3 + $0x240] sm:$0xff]  ;;  %v117_v19 = vld [vmem:[#allocation3 + $0x268] sm:$0xff]  ;;  %v2145_v20 = vcombine.low %v104_v8, %v108_v9 }
  0x29   :  { %v116_v17 = vld [vmem:[#allocation3 + $0x260] sm:$0xff]  ;;  %v2156_v23 = vcombine.high %v113_v18, %v117_v19  ;;  %v121_v26 = vld [vmem:[#allocation3 + $0x288] sm:$0xff]  ;;  %v2155_v29 = vcombine.low %v113_v18, %v117_v19 }
  0x2a   :  { %1656 = vmatpush1.bf16.msra.mxu0 %v2113_v46  ;;  %1738 = vmatpush1.bf16.msra.mxu1 %v2115_v49  ;;  %v2154_v22 = vcombine.high %v112_v16, %v116_v17  ;;  %v120_v24 = vld [vmem:[#allocation3 + $0x280] sm:$0xff]  ;;  %v125_v27 = vld [vmem:[#allocation3 + $0x2a8] sm:$0xff]  ;;  %v2153_v28 = vcombine.low %v112_v16, %v116_v17 }
  0x2b   :  { %1657 = vmatprep.subr.bf16.mxu0 %v2122_v50  ;;  %1739 = vmatprep.subr.bf16.mxu1 %v2124_v51  ;;  %v124_v25 = vld [vmem:[#allocation3 + $0x2a0] sm:$0xff]  ;;  %v2164_v31 = vcombine.high %v121_v26, %v125_v27  ;;  %v129_v34 = vld [vmem:[#allocation3 + $0x2c8] sm:$0xff]  ;;  %v2163_v37 = vcombine.low %v121_v26, %v125_v27 }
  0x2c   :  { %v2162_v30 = vcombine.high %v120_v24, %v124_v25  ;;  %v128_v32 = vld [vmem:[#allocation3 + $0x2c0] sm:$0xff]  ;;  %v133_v35 = vld [vmem:[#allocation3 + $0x2e8] sm:$0xff]  ;;  %v2161_v36 = vcombine.low %v120_v24, %v124_v25 }
  0x2d   :  { %v132_v33 = vld [vmem:[#allocation3 + $0x2e0] sm:$0xff]  ;;  %v2172_v39 = vcombine.high %v129_v34, %v133_v35  ;;  %v137_v42 = vld [vmem:[#allocation3 + $0x308] sm:$0xff]  ;;  %v2171_v45 = vcombine.low %v129_v34, %v133_v35 }
  0x2e   :  { %1658 = vmatpush1.bf16.msra.mxu0 %v2121_v56  ;;  %1740 = vmatpush1.bf16.msra.mxu1 %v2123_v58  ;;  %v2170_v38 = vcombine.high %v128_v32, %v132_v33  ;;  %v136_v40 = vld [vmem:[#allocation3 + $0x300] sm:$0xff]  ;;  %v141_v43 = vld [vmem:[#allocation3 + $0x328] sm:$0xff]  ;;  %v2169_v44 = vcombine.low %v128_v32, %v132_v33 }
  0x2f   :  { %1659 = vmatprep.subr.bf16.mxu0 %v2130_v59  ;;  %1741 = vmatprep.subr.bf16.mxu1 %v2132_v61  ;;  %v140_v41 = vld [vmem:[#allocation3 + $0x320] sm:$0xff]  ;;  %v2180_v48 = vcombine.high %v137_v42, %v141_v43  ;;  %v145_v51 = vld [vmem:[#allocation3 + $0x348] sm:$0xff]  ;;  %v2179_v54 = vcombine.low %v137_v42, %v141_v43 }
  0x30   :  { %v2178_v46 = vcombine.high %v136_v40, %v140_v41  ;;  %v144_v49 = vld [vmem:[#allocation3 + $0x340] sm:$0xff]  ;;  %v149_v52 = vld [vmem:[#allocation3 + $0x368] sm:$0xff]  ;;  %v2177_v53 = vcombine.low %v136_v40, %v140_v41 }
  0x31   :  { %v148_v50 = vld [vmem:[#allocation3 + $0x360] sm:$0xff]  ;;  %v2188_v56 = vcombine.high %v145_v51, %v149_v52  ;;  %v153_v61 = vld [vmem:[#allocation3 + $0x388] sm:$0xff]  ;;  %v2187_v0 = vcombine.low %v145_v51, %v149_v52 }
  0x32   :  { %1660 = vmatpush1.bf16.msra.mxu0 %v2129_v3  ;;  %1742 = vmatpush1.bf16.msra.mxu1 %v2131_v5  ;;  %v2186_v55 = vcombine.high %v144_v49, %v148_v50  ;;  %v152_v58 = vld [vmem:[#allocation3 + $0x380] sm:$0xff]  ;;  %v157_v62 = vld [vmem:[#allocation3 + $0x3a8] sm:$0xff]  ;;  %v2185_v63 = vcombine.low %v144_v49, %v148_v50 }
  0x33   :  { %1661 = vmatprep.subr.bf16.mxu0 %v2138_v6  ;;  %1743 = vmatprep.subr.bf16.mxu1 %v2140_v7  ;;  %v156_v59 = vld [vmem:[#allocation3 + $0x3a0] sm:$0xff]  ;;  %v2196_v2 = vcombine.high %v153_v61, %v157_v62  ;;  %v161_v6 = vld [vmem:[#allocation3 + $0x3c8] sm:$0xff]  ;;  %v2195_v9 = vcombine.low %v153_v61, %v157_v62 }
  0x34   :  { %v2194_v1 = vcombine.high %v152_v58, %v156_v59  ;;  %v160_v3 = vld [vmem:[#allocation3 + $0x3c0] sm:$0xff]  ;;  %v165_v7 = vld [vmem:[#allocation3 + $0x3e8] sm:$0xff]  ;;  %v2193_v8 = vcombine.low %v152_v58, %v156_v59 }
  0x35   :  { %v164_v5 = vld [vmem:[#allocation3 + $0x3e0] sm:$0xff]  ;;  %v2204_v11 = vcombine.high %v161_v6, %v165_v7  ;;  %v2203_v17 = vcombine.low %v161_v6, %v165_v7  ;;  %v181_v24 = vld [vmem:[#allocation3 + $0x468] sm:$0xff] }
  0x36   :  { %1662 = vmatpush1.bf16.msra.mxu0 %v2137_v12  ;;  %1744 = vmatpush1.bf16.msra.mxu1 %v2139_v13  ;;  %v2202_v10 = vcombine.high %v160_v3, %v164_v5  ;;  %v168_v12 = vld [vmem:[#allocation3 + $0x400] sm:$0xff]  ;;  %v2201_v16 = vcombine.low %v160_v3, %v164_v5 }
  0x37   :  { %1663 = vmatprep.subr.bf16.mxu0 %v2146_v14  ;;  %1745 = vmatprep.subr.bf16.mxu1 %v2148_v15  ;;  %v172_v13 = vld [vmem:[#allocation3 + $0x420] sm:$0xff]  ;;  %v169_v14 = vld [vmem:[#allocation3 + $0x408] sm:$0xff] }
  0x38   :  { %v173_v15 = vld [vmem:[#allocation3 + $0x428] sm:$0xff]  ;;  %v2210_v18 = vcombine.high %v168_v12, %v172_v13  ;;  %v2209_v25 = vcombine.low %v168_v12, %v172_v13 }
  0x39   :  { %v2212_v19 = vcombine.high %v169_v14, %v173_v15  ;;  %v2211_v26 = vcombine.low %v169_v14, %v173_v15 }
  0x3a   :  { %1664 = vmatpush1.bf16.msra.mxu0 %v2145_v20  ;;  %1746 = vmatpush1.bf16.msra.mxu1 %v2147_v21  ;;  %v176_v20 = vld [vmem:[#allocation3 + $0x440] sm:$0xff] }
  0x3b   :  { %1665 = vmatprep.subr.bf16.mxu0 %v2154_v22  ;;  %1747 = vmatprep.subr.bf16.mxu1 %v2156_v23  ;;  %v180_v21 = vld [vmem:[#allocation3 + $0x460] sm:$0xff]  ;;  %v2487_v22 = vrot.slane %v2476_v60, %v2471_v57  ;;  %v177_v23 = vld [vmem:[#allocation3 + $0x448] sm:$0xff] }
  0x3c   :  { %v2218_v27 = vcombine.high %v176_v20, %v180_v21  ;;  %v185_v57 = vld [vmem:[#allocation3 + $0x488] sm:$0xff]  ;;  %v2217_v32 = vcombine.low %v176_v20, %v180_v21  ;;  %v2219_v33 = vcombine.low %v177_v23, %v181_v24 }
  0x3d   :  { %v189_v60 = vld [vmem:[#allocation3 + $0x4a8] sm:$0xff] }
  0x3e   :  { %1666 = vmatpush1.bf16.msra.mxu0 %v2153_v28  ;;  %1748 = vmatpush1.bf16.msra.mxu1 %v2155_v29  ;;  %v2220_v28 = vcombine.high %v177_v23, %v181_v24  ;;  %v184_v29 = vld [vmem:[#allocation3 + $0x480] sm:$0xff]  ;;  %v2228_v35 = vcombine.high %v185_v57, %v189_v60  ;;  %v2227_v41 = vcombine.low %v185_v57, %v189_v60 }
  0x3f   :  { %1667 = vmatprep.subr.bf16.mxu0 %v2162_v30  ;;  %1749 = vmatprep.subr.bf16.mxu1 %v2164_v31  ;;  %v188_v30 = vld [vmem:[#allocation3 + $0x4a0] sm:$0xff]  ;;  %v2491_v31 = vcombine.high %v2481_v4, %v2481_v4 }
  0x40   :  { %v2226_v34 = vcombine.high %v184_v29, %v188_v30  ;;  %v2225_v40 = vcombine.low %v184_v29, %v188_v30 }
  0x42   :  { %1668 = vmatpush1.bf16.msra.mxu0 %v2161_v36  ;;  %1750 = vmatpush1.bf16.msra.mxu1 %v2163_v37  ;;  %v192_v36 = vld [vmem:[#allocation3 + $0x4c0] sm:$0xff] }
  0x43   :  { %1669 = vmatprep.subr.bf16.mxu0 %v2170_v38  ;;  %1751 = vmatprep.subr.bf16.mxu1 %v2172_v39  ;;  %v196_v37 = vld [vmem:[#allocation3 + $0x4e0] sm:$0xff]  ;;  %v193_v38 = vld [vmem:[#allocation3 + $0x4c8] sm:$0xff] }
  0x44   :  { %v197_v39 = vld [vmem:[#allocation3 + $0x4e8] sm:$0xff]  ;;  %v2234_v42 = vcombine.high %v192_v36, %v196_v37  ;;  %v2233_v49 = vcombine.low %v192_v36, %v196_v37 }
  0x45   :  { %v2236_v43 = vcombine.high %v193_v38, %v197_v39  ;;  %v2235_v50 = vcombine.low %v193_v38, %v197_v39 }
  0x46   :  { %1670 = vmatpush1.bf16.msra.mxu0 %v2169_v44  ;;  %1752 = vmatpush1.bf16.msra.mxu1 %v2171_v45  ;;  %v200_v44 = vld [vmem:[#allocation3 + $0x500] sm:$0xff] }
  0x47   :  { %1671 = vmatprep.subr.bf16.mxu0 %v2178_v46  ;;  %1753 = vmatprep.subr.bf16.mxu1 %v2180_v48  ;;  %v204_v45 = vld [vmem:[#allocation3 + $0x520] sm:$0xff]  ;;  %v201_v46 = vld [vmem:[#allocation3 + $0x508] sm:$0xff] }
  0x48   :  { %v205_v48 = vld [vmem:[#allocation3 + $0x528] sm:$0xff]  ;;  %v2242_v51 = vcombine.high %v200_v44, %v204_v45  ;;  %v2241_v58 = vcombine.low %v200_v44, %v204_v45 }
  0x49   :  { %v2244_v52 = vcombine.high %v201_v46, %v205_v48  ;;  %v2243_v59 = vcombine.low %v201_v46, %v205_v48 }
  0x4a   :  { %1672 = vmatpush1.bf16.msra.mxu0 %v2177_v53  ;;  %1754 = vmatpush1.bf16.msra.mxu1 %v2179_v54  ;;  %v208_v53 = vld [vmem:[#allocation3 + $0x540] sm:$0xff] }
  0x4b   :  { %1673 = vmatprep.subr.bf16.mxu0 %v2186_v55  ;;  %1755 = vmatprep.subr.bf16.mxu1 %v2188_v56  ;;  %v212_v54 = vld [vmem:[#allocation3 + $0x560] sm:$0xff]  ;;  %v209_v55 = vld [vmem:[#allocation3 + $0x548] sm:$0xff] }
  0x4c   :  { %v213_v56 = vld [vmem:[#allocation3 + $0x568] sm:$0xff]  ;;  %v2250_v61 = vcombine.high %v208_v53, %v212_v54  ;;  %v2249_v3 = vcombine.low %v208_v53, %v212_v54 }
  0x4d   :  { %v2252_v62 = vcombine.high %v209_v55, %v213_v56  ;;  %v2251_v5 = vcombine.low %v209_v55, %v213_v56 }
  0x4e   :  { %1674 = vmatpush1.bf16.msra.mxu0 %v2185_v63  ;;  %1756 = vmatpush1.bf16.msra.mxu1 %v2187_v0  ;;  %v216_v63 = vld [vmem:[#allocation3 + $0x580] sm:$0xff] }
  0x4f   :  { %1675 = vmatprep.subr.bf16.mxu0 %v2194_v1  ;;  %1757 = vmatprep.subr.bf16.mxu1 %v2196_v2  ;;  %v220_v0 = vld [vmem:[#allocation3 + $0x5a0] sm:$0xff]  ;;  %v217_v1 = vld [vmem:[#allocation3 + $0x588] sm:$0xff] }
  0x50   :  { %v221_v2 = vld [vmem:[#allocation3 + $0x5a8] sm:$0xff]  ;;  %v2258_v6 = vcombine.high %v216_v63, %v220_v0  ;;  %v2257_v12 = vcombine.low %v216_v63, %v220_v0 }
  0x51   :  { %v2260_v7 = vcombine.high %v217_v1, %v221_v2  ;;  %v2259_v13 = vcombine.low %v217_v1, %v221_v2 }
  0x52   :  { %1676 = vmatpush1.bf16.msra.mxu0 %v2193_v8  ;;  %1758 = vmatpush1.bf16.msra.mxu1 %v2195_v9  ;;  %v224_v8 = vld [vmem:[#allocation3 + $0x5c0] sm:$0xff] }
  0x53   :  { %1677 = vmatprep.subr.bf16.mxu0 %v2202_v10  ;;  %1759 = vmatprep.subr.bf16.mxu1 %v2204_v11  ;;  %v228_v9 = vld [vmem:[#allocation3 + $0x5e0] sm:$0xff]  ;;  %v225_v10 = vld [vmem:[#allocation3 + $0x5c8] sm:$0xff] }
  0x54   :  { %v229_v11 = vld [vmem:[#allocation3 + $0x5e8] sm:$0xff]  ;;  %v2266_v14 = vcombine.high %v224_v8, %v228_v9  ;;  %v2265_v20 = vcombine.low %v224_v8, %v228_v9 }
  0x55   :  { %v2268_v15 = vcombine.high %v225_v10, %v229_v11  ;;  %v2267_v21 = vcombine.low %v225_v10, %v229_v11 }
  0x56   :  { %1678 = vmatpush1.bf16.msra.mxu0 %v2201_v16  ;;  %1760 = vmatpush1.bf16.msra.mxu1 %v2203_v17  ;;  %v232_v16 = vld [vmem:[#allocation3 + $0x600] sm:$0xff] }
  0x57   :  { %1688 = vmatprep.subr.bf16.mxu0 %v2210_v18  ;;  %1770 = vmatprep.subr.bf16.mxu1 %v2212_v19  ;;  %v236_v17 = vld [vmem:[#allocation3 + $0x620] sm:$0xff]  ;;  %v233_v18 = vld [vmem:[#allocation3 + $0x608] sm:$0xff] }
  0x58   :  { %v237_v19 = vld [vmem:[#allocation3 + $0x628] sm:$0xff]  ;;  %v2274_v23 = vcombine.high %v232_v16, %v236_v17  ;;  %v2273_v29 = vcombine.low %v232_v16, %v236_v17 }
  0x59   :  { %1680 = vmatmul.mubr.bf16.vlgmr.msra.gmra.mrb[0].mxu0 %v2487_v22  ;;  %1762 = vmatmul.mubr.bf16.vlgmr.msra.gmra.mrb[0].mxu1 %v2487_v22  ;;  %v2276_v24 = vcombine.high %v233_v18, %v237_v19  ;;  %v2275_v30 = vcombine.low %v233_v18, %v237_v19 }
  0x5a   :  { %1689 = vmatpush1.bf16.msra.mxu0 %v2209_v25  ;;  %1771 = vmatpush1.bf16.msra.mxu1 %v2211_v26  ;;  %v240_v25 = vld [vmem:[#allocation3 + $0x640] sm:$0xff] }
  0x5b   :  { %1690 = vmatprep.subr.bf16.mxu0 %v2218_v27  ;;  %1772 = vmatprep.subr.bf16.mxu1 %v2220_v28  ;;  %v244_v26 = vld [vmem:[#allocation3 + $0x660] sm:$0xff]  ;;  %v241_v27 = vld [vmem:[#allocation3 + $0x648] sm:$0xff] }
  0x5c   :  { %1720 = vmatprep.mubr.bf16.mxu0 %v2491_v31  ;;  %1802 = vmatprep.mubr.bf16.mxu1 %v2491_v31  ;;  %v245_v28 = vld [vmem:[#allocation3 + $0x668] sm:$0xff]  ;;  %v2282_v57 = vcombine.high %v240_v25, %v244_v26  ;;  %v2281_v36 = vcombine.low %v240_v25, %v244_v26 }
  0x5d   :  { %v2284_v60 = vcombine.high %v241_v27, %v245_v28  ;;  %v2283_v37 = vcombine.low %v241_v27, %v245_v28 }
  0x5e   :  { %1691 = vmatpush1.bf16.msra.mxu0 %v2217_v32  ;;  %1773 = vmatpush1.bf16.msra.mxu1 %v2219_v33  ;;  %v248_v32 = vld [vmem:[#allocation3 + $0x680] sm:$0xff] }
  0x5f   :  { %1692 = vmatprep.subr.bf16.mxu0 %v2226_v34  ;;  %1774 = vmatprep.subr.bf16.mxu1 %v2228_v35  ;;  %v252_v33 = vld [vmem:[#allocation3 + $0x6a0] sm:$0xff]  ;;  %v249_v34 = vld [vmem:[#allocation3 + $0x688] sm:$0xff] }
  0x60   :  { %v253_v35 = vld [vmem:[#allocation3 + $0x6a8] sm:$0xff]  ;;  %v2290_v38 = vcombine.high %v248_v32, %v252_v33  ;;  %v2289_v44 = vcombine.low %v248_v32, %v252_v33  ;;  %v55_v32 = vld [vmem:[#allocation3 + $0x78] sm:$0xff] }
  0x61   :  { %v2292_v39 = vcombine.high %v249_v34, %v253_v35  ;;  %v2291_v45 = vcombine.low %v249_v34, %v253_v35 }
  0x62   :  { %1693 = vmatpush1.bf16.msra.mxu0 %v2225_v40  ;;  %1775 = vmatpush1.bf16.msra.mxu1 %v2227_v41  ;;  %v256_v40 = vld [vmem:[#allocation3 + $0x6c0] sm:$0xff] }
  0x63   :  { %1694 = vmatprep.subr.bf16.mxu0 %v2234_v42  ;;  %1776 = vmatprep.subr.bf16.mxu1 %v2236_v43  ;;  %v260_v41 = vld [vmem:[#allocation3 + $0x6e0] sm:$0xff]  ;;  %v257_v42 = vld [vmem:[#allocation3 + $0x6c8] sm:$0xff] }
  0x64   :  { %v261_v43 = vld [vmem:[#allocation3 + $0x6e8] sm:$0xff]  ;;  %v2298_v46 = vcombine.high %v256_v40, %v260_v41  ;;  %v2297_v53 = vcombine.low %v256_v40, %v260_v41  ;;  %v63_v40 = vld [vmem:[#allocation3 + $0xb8] sm:$0xff] }
  0x65   :  { %v2300_v48 = vcombine.high %v257_v42, %v261_v43  ;;  %v2299_v54 = vcombine.low %v257_v42, %v261_v43 }
  0x66   :  { %1695 = vmatpush1.bf16.msra.mxu0 %v2233_v49  ;;  %1777 = vmatpush1.bf16.msra.mxu1 %v2235_v50  ;;  %v264_v49 = vld [vmem:[#allocation3 + $0x700] sm:$0xff] }
  0x67   :  { %1696 = vmatprep.subr.bf16.mxu0 %v2242_v51  ;;  %1778 = vmatprep.subr.bf16.mxu1 %v2244_v52  ;;  %v268_v50 = vld [vmem:[#allocation3 + $0x720] sm:$0xff]  ;;  %v265_v51 = vld [vmem:[#allocation3 + $0x708] sm:$0xff] }
  0x68   :  { %v269_v52 = vld [vmem:[#allocation3 + $0x728] sm:$0xff]  ;;  %v2306_v55 = vcombine.high %v264_v49, %v268_v50  ;;  %v2305_v63 = vcombine.low %v264_v49, %v268_v50  ;;  %v71_v49 = vld [vmem:[#allocation3 + $0xf8] sm:$0xff] }
  0x69   :  { %v2308_v56 = vcombine.high %v265_v51, %v269_v52  ;;  %v2307_v0 = vcombine.low %v265_v51, %v269_v52 }
  0x6a   :  { %1697 = vmatpush1.bf16.msra.mxu0 %v2241_v58  ;;  %1779 = vmatpush1.bf16.msra.mxu1 %v2243_v59  ;;  %v272_v58 = vld [vmem:[#allocation3 + $0x740] sm:$0xff] }
  0x6b   :  { %1698 = vmatprep.subr.bf16.mxu0 %v2250_v61  ;;  %1780 = vmatprep.subr.bf16.mxu1 %v2252_v62  ;;  %v276_v59 = vld [vmem:[#allocation3 + $0x760] sm:$0xff]  ;;  %v273_v61 = vld [vmem:[#allocation3 + $0x748] sm:$0xff] }
  0x6c   :  { %v277_v62 = vld [vmem:[#allocation3 + $0x768] sm:$0xff]  ;;  %v2314_v1 = vcombine.high %v272_v58, %v276_v59  ;;  %v2313_v8 = vcombine.low %v272_v58, %v276_v59  ;;  %v79_v58 = vld [vmem:[#allocation3 + $0x138] sm:$0xff] }
  0x6d   :  { %v2316_v2 = vcombine.high %v273_v61, %v277_v62  ;;  %v2315_v9 = vcombine.low %v273_v61, %v277_v62 }
  0x6e   :  { %1699 = vmatpush1.bf16.msra.mxu0 %v2249_v3  ;;  %1781 = vmatpush1.bf16.msra.mxu1 %v2251_v5  ;;  %v280_v3 = vld [vmem:[#allocation3 + $0x780] sm:$0xff] }
  0x6f   :  { %1700 = vmatprep.subr.bf16.mxu0 %v2258_v6  ;;  %1782 = vmatprep.subr.bf16.mxu1 %v2260_v7  ;;  %v284_v5 = vld [vmem:[#allocation3 + $0x7a0] sm:$0xff]  ;;  %v281_v6 = vld [vmem:[#allocation3 + $0x788] sm:$0xff] }
  0x70   :  { %v285_v7 = vld [vmem:[#allocation3 + $0x7a8] sm:$0xff]  ;;  %v2322_v10 = vcombine.high %v280_v3, %v284_v5  ;;  %v2321_v16 = vcombine.low %v280_v3, %v284_v5 }
  0x71   :  { %v2324_v11 = vcombine.high %v281_v6, %v285_v7  ;;  %v2323_v17 = vcombine.low %v281_v6, %v285_v7 }
  0x72   :  { %1701 = vmatpush1.bf16.msra.mxu0 %v2257_v12  ;;  %1783 = vmatpush1.bf16.msra.mxu1 %v2259_v13  ;;  %v288_v12 = vld [vmem:[#allocation3 + $0x7c0] sm:$0xff] }
  0x73   :  { %1702 = vmatprep.subr.bf16.mxu0 %v2266_v14  ;;  %1784 = vmatprep.subr.bf16.mxu1 %v2268_v15  ;;  %v292_v13 = vld [vmem:[#allocation3 + $0x7e0] sm:$0xff]  ;;  %v289_v14 = vld [vmem:[#allocation3 + $0x7c8] sm:$0xff] }
  0x74   :  { %v293_v15 = vld [vmem:[#allocation3 + $0x7e8] sm:$0xff]  ;;  %v2330_v18 = vcombine.high %v288_v12, %v292_v13  ;;  %v2329_v25 = vcombine.low %v288_v12, %v292_v13 }
  0x75   :  { %v2332_v19 = vcombine.high %v289_v14, %v293_v15  ;;  %v2331_v26 = vcombine.low %v289_v14, %v293_v15 }
  0x76   :  { %1703 = vmatpush1.bf16.msra.mxu0 %v2265_v20  ;;  %1785 = vmatpush1.bf16.msra.mxu1 %v2267_v21  ;;  %v42_v20 = vld [vmem:[#allocation3 + $0x10] sm:$0xff] }
  0x77   :  { %1704 = vmatprep.subr.bf16.mxu0 %v2274_v23  ;;  %1786 = vmatprep.subr.bf16.mxu1 %v2276_v24  ;;  %v46_v21 = vld [vmem:[#allocation3 + $0x30] sm:$0xff]  ;;  %v43_v23 = vld [vmem:[#allocation3 + $0x18] sm:$0xff] }
  0x78   :  { %v47_v24 = vld [vmem:[#allocation3 + $0x38] sm:$0xff]  ;;  %v2086_v27 = vcombine.high %v42_v20, %v46_v21  ;;  %v2085_v33 = vcombine.low %v42_v20, %v46_v21 }
  0x79   :  { %v2088_v28 = vcombine.high %v43_v23, %v47_v24  ;;  %v2087_v34 = vcombine.low %v43_v23, %v47_v24 }
  0x7a   :  { %1705 = vmatpush1.bf16.msra.mxu0 %v2273_v29  ;;  %1787 = vmatpush1.bf16.msra.mxu1 %v2275_v30  ;;  %v50_v29 = vld [vmem:[#allocation3 + $0x50] sm:$0xff] }
  0x7b   :  { %1706 = vmatprep.subr.bf16.mxu0 %v2282_v57  ;;  %1788 = vmatprep.subr.bf16.mxu1 %v2284_v60  ;;  %v54_v30 = vld [vmem:[#allocation3 + $0x70] sm:$0xff]  ;;  %v2499_v57 = vcombine.high %v2487_v22, %v2487_v22  ;;  %v51_v60 = vld [vmem:[#allocation3 + $0x58] sm:$0xff] }
  0x7c   :  { %v2094_v35 = vcombine.high %v50_v29, %v54_v30  ;;  %v2093_v41 = vcombine.low %v50_v29, %v54_v30  ;;  %v2095_v42 = vcombine.low %v51_v60, %v55_v32 }
  0x7e   :  { %1707 = vmatpush1.bf16.msra.mxu0 %v2281_v36  ;;  %1789 = vmatpush1.bf16.msra.mxu1 %v2283_v37  ;;  %v2096_v36 = vcombine.high %v51_v60, %v55_v32  ;;  %v58_v37 = vld [vmem:[#allocation3 + $0x90] sm:$0xff] }
  0x7f   :  { %1708 = vmatprep.subr.bf16.mxu0 %v2290_v38  ;;  %1790 = vmatprep.subr.bf16.mxu1 %v2292_v39  ;;  %v62_v38 = vld [vmem:[#allocation3 + $0xb0] sm:$0xff]  ;;  %v59_v39 = vld [vmem:[#allocation3 + $0x98] sm:$0xff] }
  0x80   :  { %v2102_v43 = vcombine.high %v58_v37, %v62_v38  ;;  %v2101_v50 = vcombine.low %v58_v37, %v62_v38  ;;  %v2103_v51 = vcombine.low %v59_v39, %v63_v40 }
  0x82   :  { %1709 = vmatpush1.bf16.msra.mxu0 %v2289_v44  ;;  %1791 = vmatpush1.bf16.msra.mxu1 %v2291_v45  ;;  %v2104_v44 = vcombine.high %v59_v39, %v63_v40  ;;  %v66_v45 = vld [vmem:[#allocation3 + $0xd0] sm:$0xff] }
  0x83   :  { %1710 = vmatprep.subr.bf16.mxu0 %v2298_v46  ;;  %1792 = vmatprep.subr.bf16.mxu1 %v2300_v48  ;;  %v70_v46 = vld [vmem:[#allocation3 + $0xf0] sm:$0xff]  ;;  %v67_v48 = vld [vmem:[#allocation3 + $0xd8] sm:$0xff] }
  0x84   :  { %v2110_v52 = vcombine.high %v66_v45, %v70_v46  ;;  %v2109_v59 = vcombine.low %v66_v45, %v70_v46  ;;  %v2111_v61 = vcombine.low %v67_v48, %v71_v49 }
  0x86   :  { %1711 = vmatpush1.bf16.msra.mxu0 %v2297_v53  ;;  %1793 = vmatpush1.bf16.msra.mxu1 %v2299_v54  ;;  %v2112_v53 = vcombine.high %v67_v48, %v71_v49  ;;  %v74_v54 = vld [vmem:[#allocation3 + $0x110] sm:$0xff] }
  0x87   :  { %1712 = vmatprep.subr.bf16.mxu0 %v2306_v55  ;;  %1794 = vmatprep.subr.bf16.mxu1 %v2308_v56  ;;  %v78_v55 = vld [vmem:[#allocation3 + $0x130] sm:$0xff]  ;;  %v75_v56 = vld [vmem:[#allocation3 + $0x118] sm:$0xff] }
  0x88   :  { %v2118_v62 = vcombine.high %v74_v54, %v78_v55  ;;  %v2117_v3 = vcombine.low %v74_v54, %v78_v55  ;;  %v2119_v5 = vcombine.low %v75_v56, %v79_v58 }
  0x8a   :  { %1713 = vmatpush1.bf16.msra.mxu0 %v2305_v63  ;;  %1795 = vmatpush1.bf16.msra.mxu1 %v2307_v0  ;;  %v82_v63 = vld [vmem:[#allocation3 + $0x150] sm:$0xff] }
  0x8b   :  { %1714 = vmatprep.subr.bf16.mxu0 %v2314_v1  ;;  %1796 = vmatprep.subr.bf16.mxu1 %v2316_v2  ;;  %v86_v0 = vld [vmem:[#allocation3 + $0x170] sm:$0xff]  ;;  %v83_v1 = vld [vmem:[#allocation3 + $0x158] sm:$0xff] }
  0x8c   :  { %v87_v2 = vld [vmem:[#allocation3 + $0x178] sm:$0xff]  ;;  %v2126_v6 = vcombine.high %v82_v63, %v86_v0  ;;  %v2125_v12 = vcombine.low %v82_v63, %v86_v0 }
  0x8d   :  { %v2128_v7 = vcombine.high %v83_v1, %v87_v2  ;;  %v2127_v13 = vcombine.low %v83_v1, %v87_v2 }
  0x8e   :  { %1715 = vmatpush1.bf16.msra.mxu0 %v2313_v8  ;;  %1797 = vmatpush1.bf16.msra.mxu1 %v2315_v9  ;;  %v90_v8 = vld [vmem:[#allocation3 + $0x190] sm:$0xff] }
  0x8f   :  { %1716 = vmatprep.subr.bf16.mxu0 %v2322_v10  ;;  %1798 = vmatprep.subr.bf16.mxu1 %v2324_v11  ;;  %v94_v9 = vld [vmem:[#allocation3 + $0x1b0] sm:$0xff]  ;;  %v91_v10 = vld [vmem:[#allocation3 + $0x198] sm:$0xff] }
  0x90   :  { %v95_v11 = vld [vmem:[#allocation3 + $0x1b8] sm:$0xff]  ;;  %v2134_v14 = vcombine.high %v90_v8, %v94_v9  ;;  %v2133_v20 = vcombine.low %v90_v8, %v94_v9 }
  0x91   :  { %v2136_v15 = vcombine.high %v91_v10, %v95_v11  ;;  %v2135_v21 = vcombine.low %v91_v10, %v95_v11 }
  0x92   :  { %1717 = vmatpush1.bf16.msra.mxu0 %v2321_v16  ;;  %1799 = vmatpush1.bf16.msra.mxu1 %v2323_v17  ;;  %v98_v16 = vld [vmem:[#allocation3 + $0x1d0] sm:$0xff] }
  0x93   :  { %1718 = vmatprep.subr.bf16.mxu0 %v2330_v18  ;;  %1800 = vmatprep.subr.bf16.mxu1 %v2332_v19  ;;  %v102_v17 = vld [vmem:[#allocation3 + $0x1f0] sm:$0xff]  ;;  %v99_v18 = vld [vmem:[#allocation3 + $0x1d8] sm:$0xff] }
  0x94   :  { %v103_v19 = vld [vmem:[#allocation3 + $0x1f8] sm:$0xff]  ;;  %v2142_v23 = vcombine.high %v98_v16, %v102_v17  ;;  %v2141_v29 = vcombine.low %v98_v16, %v102_v17 }
  0x95   :  { %v2144_v24 = vcombine.high %v99_v18, %v103_v19  ;;  %v2143_v30 = vcombine.low %v99_v18, %v103_v19 }
  0x96   :  { %1719 = vmatpush1.bf16.msra.mxu0 %v2329_v25  ;;  %1801 = vmatpush1.bf16.msra.mxu1 %v2331_v26  ;;  %v106_v25 = vld [vmem:[#allocation3 + $0x210] sm:$0xff] }
  0x97   :  { %1811 = vmatprep.subr.bf16.mxu0 %v2086_v27  ;;  %1893 = vmatprep.subr.bf16.mxu1 %v2088_v28  ;;  %v110_v26 = vld [vmem:[#allocation3 + $0x230] sm:$0xff]  ;;  %v107_v27 = vld [vmem:[#allocation3 + $0x218] sm:$0xff] }
  0x98   :  { %v111_v28 = vld [vmem:[#allocation3 + $0x238] sm:$0xff]  ;;  %v2150_v60 = vcombine.high %v106_v25, %v110_v26  ;;  %v2149_v37 = vcombine.low %v106_v25, %v110_v26 }
  0x99   :  { %1721 = vmatmul.mubr.bf16.vlgmr.msra.gmra.mrb[0].mxu0 %v2499_v57  ;;  %1803 = vmatmul.mubr.bf16.vlgmr.msra.gmra.mrb[0].mxu1 %v2499_v57  ;;  %v2152_v32 = vcombine.high %v107_v27, %v111_v28  ;;  %v2151_v38 = vcombine.low %v107_v27, %v111_v28 }
  0x9a   :  { %1812 = vmatpush1.bf16.msra.mxu0 %v2085_v33  ;;  %1894 = vmatpush1.bf16.msra.mxu1 %v2087_v34  ;;  %v114_v33 = vld [vmem:[#allocation3 + $0x250] sm:$0xff] }
  0x9b   :  { %1813 = vmatprep.subr.bf16.mxu0 %v2094_v35  ;;  %1895 = vmatprep.subr.bf16.mxu1 %v2096_v36  ;;  %v118_v34 = vld [vmem:[#allocation3 + $0x270] sm:$0xff]  ;;  %v115_v35 = vld [vmem:[#allocation3 + $0x258] sm:$0xff] }
  0x9c   :  { %1843 = vmatprep.mubr.bf16.mxu0 %v2481_v4  ;;  %1925 = vmatprep.mubr.bf16.mxu1 %v2481_v4  ;;  %v2120_v4 = vcombine.high %v75_v56, %v79_v58  ;;  %v119_v36 = vld [vmem:[#allocation3 + $0x278] sm:$0xff]  ;;  %v2158_v39 = vcombine.high %v114_v33, %v118_v34  ;;  %v2157_v45 = vcombine.low %v114_v33, %v118_v34 }
  0x9d   :  { %v2160_v40 = vcombine.high %v115_v35, %v119_v36  ;;  %v2159_v46 = vcombine.low %v115_v35, %v119_v36 }
  0x9e   :  { %1814 = vmatpush1.bf16.msra.mxu0 %v2093_v41  ;;  %1896 = vmatpush1.bf16.msra.mxu1 %v2095_v42  ;;  %v122_v41 = vld [vmem:[#allocation3 + $0x290] sm:$0xff] }
  0x9f   :  { %1815 = vmatprep.subr.bf16.mxu0 %v2102_v43  ;;  %1897 = vmatprep.subr.bf16.mxu1 %v2104_v44  ;;  %v126_v42 = vld [vmem:[#allocation3 + $0x2b0] sm:$0xff]  ;;  %v123_v43 = vld [vmem:[#allocation3 + $0x298] sm:$0xff] }
  0xa0   :  { %v127_v44 = vld [vmem:[#allocation3 + $0x2b8] sm:$0xff]  ;;  %v2166_v48 = vcombine.high %v122_v41, %v126_v42  ;;  %v2165_v54 = vcombine.low %v122_v41, %v126_v42 }
  0xa1   :  { %v2168_v49 = vcombine.high %v123_v43, %v127_v44  ;;  %v2167_v55 = vcombine.low %v123_v43, %v127_v44 }
  0xa2   :  { %1816 = vmatpush1.bf16.msra.mxu0 %v2101_v50  ;;  %1898 = vmatpush1.bf16.msra.mxu1 %v2103_v51  ;;  %v130_v50 = vld [vmem:[#allocation3 + $0x2d0] sm:$0xff] }
  0xa3   :  { %1817 = vmatprep.subr.bf16.mxu0 %v2110_v52  ;;  %1899 = vmatprep.subr.bf16.mxu1 %v2112_v53  ;;  %v134_v51 = vld [vmem:[#allocation3 + $0x2f0] sm:$0xff]  ;;  %v131_v52 = vld [vmem:[#allocation3 + $0x2d8] sm:$0xff] }
  0xa4   :  { %v135_v53 = vld [vmem:[#allocation3 + $0x2f8] sm:$0xff]  ;;  %v2174_v56 = vcombine.high %v130_v50, %v134_v51  ;;  %v2173_v63 = vcombine.low %v130_v50, %v134_v51 }
  0xa5   :  { %v2176_v58 = vcombine.high %v131_v52, %v135_v53  ;;  %v2175_v0 = vcombine.low %v131_v52, %v135_v53 }
  0xa6   :  { %1818 = vmatpush1.bf16.msra.mxu0 %v2109_v59  ;;  %1900 = vmatpush1.bf16.msra.mxu1 %v2111_v61  ;;  %v138_v59 = vld [vmem:[#allocation3 + $0x310] sm:$0xff] }
  0xa7   :  { %1819 = vmatprep.subr.bf16.mxu0 %v2118_v62  ;;  %1901 = vmatprep.subr.bf16.mxu1 %v2120_v4  ;;  %v142_v61 = vld [vmem:[#allocation3 + $0x330] sm:$0xff]  ;;  %v139_v62 = vld [vmem:[#allocation3 + $0x318] sm:$0xff] }
  0xa8   :  { %v143_v4 = vld [vmem:[#allocation3 + $0x338] sm:$0xff]  ;;  %v2182_v1 = vcombine.high %v138_v59, %v142_v61  ;;  %v2181_v8 = vcombine.low %v138_v59, %v142_v61 }
  0xa9   :  { %v2184_v2 = vcombine.high %v139_v62, %v143_v4  ;;  %v2183_v9 = vcombine.low %v139_v62, %v143_v4  ;;  %v202_v4 = vld [vmem:[#allocation3 + $0x510] sm:$0xff] }
  0xaa   :  { %1820 = vmatpush1.bf16.msra.mxu0 %v2117_v3  ;;  %1902 = vmatpush1.bf16.msra.mxu1 %v2119_v5  ;;  %v146_v3 = vld [vmem:[#allocation3 + $0x350] sm:$0xff] }
  0xab   :  { %1821 = vmatprep.subr.bf16.mxu0 %v2126_v6  ;;  %1903 = vmatprep.subr.bf16.mxu1 %v2128_v7  ;;  %v150_v5 = vld [vmem:[#allocation3 + $0x370] sm:$0xff]  ;;  %v147_v6 = vld [vmem:[#allocation3 + $0x358] sm:$0xff] }
  0xac   :  { %v151_v7 = vld [vmem:[#allocation3 + $0x378] sm:$0xff]  ;;  %v2190_v10 = vcombine.high %v146_v3, %v150_v5  ;;  %v2189_v16 = vcombine.low %v146_v3, %v150_v5 }
  0xad   :  { %v2192_v11 = vcombine.high %v147_v6, %v151_v7  ;;  %v2191_v17 = vcombine.low %v147_v6, %v151_v7  ;;  %v210_v6 = vld [vmem:[#allocation3 + $0x550] sm:$0xff] }
  0xae   :  { %1822 = vmatpush1.bf16.msra.mxu0 %v2125_v12  ;;  %1904 = vmatpush1.bf16.msra.mxu1 %v2127_v13  ;;  %v154_v12 = vld [vmem:[#allocation3 + $0x390] sm:$0xff] }
  0xaf   :  { %1823 = vmatprep.subr.bf16.mxu0 %v2134_v14  ;;  %1905 = vmatprep.subr.bf16.mxu1 %v2136_v15  ;;  %v158_v13 = vld [vmem:[#allocation3 + $0x3b0] sm:$0xff]  ;;  %v155_v14 = vld [vmem:[#allocation3 + $0x398] sm:$0xff] }
  0xb0   :  { %v159_v15 = vld [vmem:[#allocation3 + $0x3b8] sm:$0xff]  ;;  %v2198_v18 = vcombine.high %v154_v12, %v158_v13  ;;  %v2197_v25 = vcombine.low %v154_v12, %v158_v13  ;;  %v214_v7 = vld [vmem:[#allocation3 + $0x570] sm:$0xff] }
  0xb1   :  { %v2200_v19 = vcombine.high %v155_v14, %v159_v15  ;;  %v2199_v26 = vcombine.low %v155_v14, %v159_v15  ;;  %v2254_v12 = vcombine.high %v210_v6, %v214_v7  ;;  %v218_v14 = vld [vmem:[#allocation3 + $0x590] sm:$0xff] }
  0xb2   :  { %1824 = vmatpush1.bf16.msra.mxu0 %v2133_v20  ;;  %1906 = vmatpush1.bf16.msra.mxu1 %v2135_v21  ;;  %v162_v20 = vld [vmem:[#allocation3 + $0x3d0] sm:$0xff] }
  0xb3   :  { %1825 = vmatprep.subr.bf16.mxu0 %v2142_v23  ;;  %1907 = vmatprep.subr.bf16.mxu1 %v2144_v24  ;;  %v166_v21 = vld [vmem:[#allocation3 + $0x3f0] sm:$0xff]  ;;  %v163_v23 = vld [vmem:[#allocation3 + $0x3d8] sm:$0xff] }
  0xb4   :  { %v167_v24 = vld [vmem:[#allocation3 + $0x3f8] sm:$0xff]  ;;  %v2206_v27 = vcombine.high %v162_v20, %v166_v21  ;;  %v2205_v33 = vcombine.low %v162_v20, %v166_v21  ;;  %v222_v15 = vld [vmem:[#allocation3 + $0x5b0] sm:$0xff] }
  0xb5   :  { %v2208_v28 = vcombine.high %v163_v23, %v167_v24  ;;  %v2207_v34 = vcombine.low %v163_v23, %v167_v24  ;;  %v2262_v20 = vcombine.high %v218_v14, %v222_v15  ;;  %v226_v23 = vld [vmem:[#allocation3 + $0x5d0] sm:$0xff] }
  0xb6   :  { %1826 = vmatpush1.bf16.msra.mxu0 %v2141_v29  ;;  %1908 = vmatpush1.bf16.msra.mxu1 %v2143_v30  ;;  %v170_v29 = vld [vmem:[#allocation3 + $0x410] sm:$0xff] }
  0xb7   :  { %1827 = vmatprep.subr.bf16.mxu0 %v2150_v60  ;;  %1909 = vmatprep.subr.bf16.mxu1 %v2152_v32  ;;  %v174_v30 = vld [vmem:[#allocation3 + $0x430] sm:$0xff]  ;;  %v171_v60 = vld [vmem:[#allocation3 + $0x418] sm:$0xff] }
  0xb8   :  { %v175_v32 = vld [vmem:[#allocation3 + $0x438] sm:$0xff]  ;;  %v2214_v35 = vcombine.high %v170_v29, %v174_v30  ;;  %v2213_v41 = vcombine.low %v170_v29, %v174_v30  ;;  %v230_v24 = vld [vmem:[#allocation3 + $0x5f0] sm:$0xff] }
  0xb9   :  { %v2216_v36 = vcombine.high %v171_v60, %v175_v32  ;;  %v2215_v42 = vcombine.low %v171_v60, %v175_v32  ;;  %v2270_v29 = vcombine.high %v226_v23, %v230_v24  ;;  %v234_v60 = vld [vmem:[#allocation3 + $0x610] sm:$0xff] }
  0xba   :  { %1828 = vmatpush1.bf16.msra.mxu0 %v2149_v37  ;;  %1910 = vmatpush1.bf16.msra.mxu1 %v2151_v38  ;;  %v178_v37 = vld [vmem:[#allocation3 + $0x450] sm:$0xff] }
  0xbb   :  { %1829 = vmatprep.subr.bf16.mxu0 %v2158_v39  ;;  %1911 = vmatprep.subr.bf16.mxu1 %v2160_v40  ;;  %v182_v38 = vld [vmem:[#allocation3 + $0x470] sm:$0xff]  ;;  %v179_v39 = vld [vmem:[#allocation3 + $0x458] sm:$0xff] }
  0xbc   :  { %v183_v40 = vld [vmem:[#allocation3 + $0x478] sm:$0xff]  ;;  %v2222_v43 = vcombine.high %v178_v37, %v182_v38  ;;  %v2221_v50 = vcombine.low %v178_v37, %v182_v38  ;;  %v238_v32 = vld [vmem:[#allocation3 + $0x630] sm:$0xff] }
  0xbd   :  { %v2224_v44 = vcombine.high %v179_v39, %v183_v40  ;;  %v2223_v51 = vcombine.low %v179_v39, %v183_v40  ;;  %v2278_v37 = vcombine.high %v234_v60, %v238_v32  ;;  %v242_v39 = vld [vmem:[#allocation3 + $0x650] sm:$0xff] }
  0xbe   :  { %1830 = vmatpush1.bf16.msra.mxu0 %v2157_v45  ;;  %1912 = vmatpush1.bf16.msra.mxu1 %v2159_v46  ;;  %v186_v45 = vld [vmem:[#allocation3 + $0x490] sm:$0xff] }
  0xbf   :  { %1831 = vmatprep.subr.bf16.mxu0 %v2166_v48  ;;  %1913 = vmatprep.subr.bf16.mxu1 %v2168_v49  ;;  %v190_v46 = vld [vmem:[#allocation3 + $0x4b0] sm:$0xff]  ;;  %v187_v48 = vld [vmem:[#allocation3 + $0x498] sm:$0xff] }
  0xc0   :  { %v191_v49 = vld [vmem:[#allocation3 + $0x4b8] sm:$0xff]  ;;  %v2230_v52 = vcombine.high %v186_v45, %v190_v46  ;;  %v2229_v59 = vcombine.low %v186_v45, %v190_v46  ;;  %v246_v40 = vld [vmem:[#allocation3 + $0x670] sm:$0xff] }
  0xc1   :  { %v2232_v53 = vcombine.high %v187_v48, %v191_v49  ;;  %v2286_v45 = vcombine.high %v242_v39, %v246_v40 }
  0xc2   :  { %1832 = vmatpush1.bf16.msra.mxu0 %v2165_v54  ;;  %1914 = vmatpush1.bf16.msra.mxu1 %v2167_v55  ;;  %v194_v54 = vld [vmem:[#allocation3 + $0x4d0] sm:$0xff] }
  0xc3   :  { %1833 = vmatprep.subr.bf16.mxu0 %v2174_v56  ;;  %1915 = vmatprep.subr.bf16.mxu1 %v2176_v58  ;;  %v198_v55 = vld [vmem:[#allocation3 + $0x4f0] sm:$0xff]  ;;  %v195_v56 = vld [vmem:[#allocation3 + $0x4d8] sm:$0xff] }
  0xc4   :  { %v199_v58 = vld [vmem:[#allocation3 + $0x4f8] sm:$0xff]  ;;  %v2238_v61 = vcombine.high %v194_v54, %v198_v55 }
  0xc5   :  { %v2240_v62 = vcombine.high %v195_v56, %v199_v58  ;;  %v2239_v3 = vcombine.low %v195_v56, %v199_v58  ;;  %v258_v56 = vld [vmem:[#allocation3 + $0x6d0] sm:$0xff] }
  0xc6   :  { %1834 = vmatpush1.bf16.msra.mxu0 %v2173_v63  ;;  %1916 = vmatpush1.bf16.msra.mxu1 %v2175_v0  ;;  %v206_v63 = vld [vmem:[#allocation3 + $0x530] sm:$0xff]  ;;  %v203_v0 = vld [vmem:[#allocation3 + $0x518] sm:$0xff] }
  0xc7   :  { %1835 = vmatprep.subr.bf16.mxu0 %v2182_v1  ;;  %1917 = vmatprep.subr.bf16.mxu1 %v2184_v2  ;;  %v207_v1 = vld [vmem:[#allocation3 + $0x538] sm:$0xff]  ;;  %v2237_v2 = vcombine.low %v194_v54, %v198_v55  ;;  %v2246_v5 = vcombine.high %v202_v4, %v206_v63  ;;  %v262_v58 = vld [vmem:[#allocation3 + $0x6f0] sm:$0xff] }
  0xca   :  { %1836 = vmatpush1.bf16.msra.mxu0 %v2181_v8  ;;  %1918 = vmatpush1.bf16.msra.mxu1 %v2183_v9  ;;  %v211_v8 = vld [vmem:[#allocation3 + $0x558] sm:$0xff] }
  0xcb   :  { %1837 = vmatprep.subr.bf16.mxu0 %v2190_v10  ;;  %1919 = vmatprep.subr.bf16.mxu1 %v2192_v11  ;;  %v215_v9 = vld [vmem:[#allocation3 + $0x578] sm:$0xff]  ;;  %v2245_v10 = vcombine.low %v202_v4, %v206_v63  ;;  %v2247_v11 = vcombine.low %v203_v0, %v207_v1  ;;  %v2302_v4 = vcombine.high %v258_v56, %v262_v58 }
  0xcc   :  { %v2256_v13 = vcombine.high %v211_v8, %v215_v9 }
  0xce   :  { %1838 = vmatpush1.bf16.msra.mxu0 %v2189_v16  ;;  %1920 = vmatpush1.bf16.msra.mxu1 %v2191_v17  ;;  %v219_v16 = vld [vmem:[#allocation3 + $0x598] sm:$0xff] }
  0xcf   :  { %1839 = vmatprep.subr.bf16.mxu0 %v2198_v18  ;;  %1921 = vmatprep.subr.bf16.mxu1 %v2200_v19  ;;  %v223_v17 = vld [vmem:[#allocation3 + $0x5b8] sm:$0xff]  ;;  %v2253_v18 = vcombine.low %v210_v6, %v214_v7  ;;  %v2255_v19 = vcombine.low %v211_v8, %v215_v9  ;;  %v274_v8 = vld [vmem:[#allocation3 + $0x750] sm:$0xff] }
  0xd0   :  { %v2264_v21 = vcombine.high %v219_v16, %v223_v17  ;;  %v278_v9 = vld [vmem:[#allocation3 + $0x770] sm:$0xff] }
  0xd2   :  { %1840 = vmatpush1.bf16.msra.mxu0 %v2197_v25  ;;  %1922 = vmatpush1.bf16.msra.mxu1 %v2199_v26  ;;  %v227_v25 = vld [vmem:[#allocation3 + $0x5d8] sm:$0xff] }
  0xd3   :  { %1841 = vmatprep.subr.bf16.mxu0 %v2206_v27  ;;  %1923 = vmatprep.subr.bf16.mxu1 %v2208_v28  ;;  %v231_v26 = vld [vmem:[#allocation3 + $0x5f8] sm:$0xff]  ;;  %v2261_v27 = vcombine.low %v218_v14, %v222_v15  ;;  %v2263_v28 = vcombine.low %v219_v16, %v223_v17  ;;  %v2318_v14 = vcombine.high %v274_v8, %v278_v9  ;;  %v282_v16 = vld [vmem:[#allocation3 + $0x790] sm:$0xff] }
  0xd4   :  { %v2272_v30 = vcombine.high %v227_v25, %v231_v26  ;;  %v286_v17 = vld [vmem:[#allocation3 + $0x7b0] sm:$0xff] }
  0xd6   :  { %1842 = vmatpush1.bf16.msra.mxu0 %v2205_v33  ;;  %1924 = vmatpush1.bf16.msra.mxu1 %v2207_v34  ;;  %v235_v33 = vld [vmem:[#allocation3 + $0x618] sm:$0xff] }
  0xd7   :  { %1852 = vmatprep.subr.bf16.mxu0 %v2214_v35  ;;  %1934 = vmatprep.subr.bf16.mxu1 %v2216_v36  ;;  %v239_v34 = vld [vmem:[#allocation3 + $0x638] sm:$0xff]  ;;  %v2269_v35 = vcombine.low %v226_v23, %v230_v24  ;;  %v2271_v36 = vcombine.low %v227_v25, %v231_v26  ;;  %v2326_v23 = vcombine.high %v282_v16, %v286_v17  ;;  %v290_v25 = vld [vmem:[#allocation3 + $0x7d0] sm:$0xff] }
  0xd8   :  { %v2280_v38 = vcombine.high %v235_v33, %v239_v34  ;;  %v294_v26 = vld [vmem:[#allocation3 + $0x7f0] sm:$0xff] }
  0xd9   :  { %1844 = vmatmul.mubr.bf16.vlgmr.msra.gmra.mrb[4].mxu0 %v2487_v22  ;;  %1926 = vmatmul.mubr.bf16.vlgmr.msra.gmra.mrb[4].mxu1 %v2487_v22  ;;  %v2231_v22 = vcombine.low %v187_v48, %v191_v49  ;;  %v250_v48 = vld [vmem:[#allocation3 + $0x690] sm:$0xff] }
  0xda   :  { %1853 = vmatpush1.bf16.msra.mxu0 %v2213_v41  ;;  %1935 = vmatpush1.bf16.msra.mxu1 %v2215_v42  ;;  %v243_v41 = vld [vmem:[#allocation3 + $0x658] sm:$0xff]  ;;  %v254_v49 = vld [vmem:[#allocation3 + $0x6b0] sm:$0xff] }
  0xdb   :  { %1854 = vmatprep.subr.bf16.mxu0 %v2222_v43  ;;  %1936 = vmatprep.subr.bf16.mxu1 %v2224_v44  ;;  %v247_v42 = vld [vmem:[#allocation3 + $0x678] sm:$0xff]  ;;  %v2277_v43 = vcombine.low %v234_v60, %v238_v32  ;;  %v2279_v44 = vcombine.low %v235_v33, %v239_v34  ;;  %v2294_v54 = vcombine.high %v250_v48, %v254_v49 }
  0xdc   :  { %1884 = vmatprep.mubr.bf16.mxu0 %v2491_v31  ;;  %1966 = vmatprep.mubr.bf16.mxu1 %v2491_v31  ;;  %v2248_v31 = vcombine.high %v203_v0, %v207_v1  ;;  %v2288_v46 = vcombine.high %v243_v41, %v247_v42  ;;  %v266_v0 = vld [vmem:[#allocation3 + $0x710] sm:$0xff]  ;;  %v2334_v60 = vcombine.high %v290_v25, %v294_v26 }
  0xdd   :  { %v270_v1 = vld [vmem:[#allocation3 + $0x730] sm:$0xff]  ;;  %v2333_v33 = vcombine.low %v290_v25, %v294_v26 }
  0xde   :  { %1855 = vmatpush1.bf16.msra.mxu0 %v2221_v50  ;;  %1937 = vmatpush1.bf16.msra.mxu1 %v2223_v51  ;;  %v251_v50 = vld [vmem:[#allocation3 + $0x698] sm:$0xff]  ;;  %v2310_v6 = vcombine.high %v266_v0, %v270_v1 }
  0xdf   :  { %1856 = vmatprep.subr.bf16.mxu0 %v2230_v52  ;;  %1938 = vmatprep.subr.bf16.mxu1 %v2232_v53  ;;  %v255_v51 = vld [vmem:[#allocation3 + $0x6b8] sm:$0xff]  ;;  %v2285_v52 = vcombine.low %v242_v39, %v246_v40  ;;  %v2287_v53 = vcombine.low %v243_v41, %v247_v42 }
  0xe0   :  { %v2296_v55 = vcombine.high %v251_v50, %v255_v51 }
  0xe2   :  { %1857 = vmatpush1.bf16.msra.mxu0 %v2229_v59  ;;  %1939 = vmatpush1.bf16.msra.mxu1 %v2231_v22  ;;  %v259_v59 = vld [vmem:[#allocation3 + $0x6d8] sm:$0xff] }
  0xe3   :  { %1858 = vmatprep.subr.bf16.mxu0 %v2238_v61  ;;  %1940 = vmatprep.subr.bf16.mxu1 %v2240_v62  ;;  %v263_v22 = vld [vmem:[#allocation3 + $0x6f8] sm:$0xff]  ;;  %v2293_v61 = vcombine.low %v250_v48, %v254_v49  ;;  %v2295_v62 = vcombine.low %v251_v50, %v255_v51 }
  0xe4   :  { %v2304_v63 = vcombine.high %v259_v59, %v263_v22 }
  0xe6   :  { %1859 = vmatpush1.bf16.msra.mxu0 %v2237_v2  ;;  %1941 = vmatpush1.bf16.msra.mxu1 %v2239_v3  ;;  %v267_v2 = vld [vmem:[#allocation3 + $0x718] sm:$0xff] }
  0xe7   :  { %1860 = vmatprep.subr.bf16.mxu0 %v2246_v5  ;;  %1942 = vmatprep.subr.bf16.mxu1 %v2248_v31  ;;  %v271_v3 = vld [vmem:[#allocation3 + $0x738] sm:$0xff]  ;;  %v2301_v5 = vcombine.low %v258_v56, %v262_v58  ;;  %v2303_v31 = vcombine.low %v259_v59, %v263_v22 }
  0xe8   :  { %v2312_v7 = vcombine.high %v267_v2, %v271_v3 }
  0xea   :  { %1861 = vmatpush1.bf16.msra.mxu0 %v2245_v10  ;;  %1943 = vmatpush1.bf16.msra.mxu1 %v2247_v11  ;;  %v275_v10 = vld [vmem:[#allocation3 + $0x758] sm:$0xff] }
  0xeb   :  { %1862 = vmatprep.subr.bf16.mxu0 %v2254_v12  ;;  %1944 = vmatprep.subr.bf16.mxu1 %v2256_v13  ;;  %v279_v11 = vld [vmem:[#allocation3 + $0x778] sm:$0xff]  ;;  %v2309_v12 = vcombine.low %v266_v0, %v270_v1  ;;  %v2311_v13 = vcombine.low %v267_v2, %v271_v3  ;;  %v2519_v0 = vsub.s32 0, %v2468_v47 }
  0xec   :  { %v2320_v15 = vcombine.high %v275_v10, %v279_v11 }
  0xee   :  { %1863 = vmatpush1.bf16.msra.mxu0 %v2253_v18  ;;  %1945 = vmatpush1.bf16.msra.mxu1 %v2255_v19  ;;  %v283_v18 = vld [vmem:[#allocation3 + $0x798] sm:$0xff] }
  0xef   :  { %1864 = vmatprep.subr.bf16.mxu0 %v2262_v20  ;;  %1946 = vmatprep.subr.bf16.mxu1 %v2264_v21  ;;  %v287_v19 = vld [vmem:[#allocation3 + $0x7b8] sm:$0xff]  ;;  %v2317_v20 = vcombine.low %v274_v8, %v278_v9  ;;  %v2319_v21 = vcombine.low %v275_v10, %v279_v11  ;;  %v312_v10 = vsub.s32 3, %v2468_v47 }
  0xf0   :  { %v2328_v24 = vcombine.high %v283_v18, %v287_v19 }
  0xf2   :  { %1865 = vmatpush1.bf16.msra.mxu0 %v2261_v27  ;;  %1947 = vmatpush1.bf16.msra.mxu1 %v2263_v28  ;;  %v291_v27 = vld [vmem:[#allocation3 + $0x7d8] sm:$0xff] }
  0xf3   :  { %1866 = vmatprep.subr.bf16.mxu0 %v2270_v29  ;;  %1948 = vmatprep.subr.bf16.mxu1 %v2272_v30  ;;  %v295_v28 = vld [vmem:[#allocation3 + $0x7f8] sm:$0xff]  ;;  %v2325_v29 = vcombine.low %v282_v16, %v286_v17  ;;  %v2327_v30 = vcombine.low %v283_v18, %v287_v19 }
  0xf4   :  { %v2336_v32 = vcombine.high %v291_v27, %v295_v28  ;;  %v2335_v34 = vcombine.low %v291_v27, %v295_v28 }
  0xf6   :  { %1867 = vmatpush1.bf16.msra.mxu0 %v2269_v35  ;;  %1949 = vmatpush1.bf16.msra.mxu1 %v2271_v36 }
  0xf7   :  { %1868 = vmatprep.subr.bf16.mxu0 %v2278_v37  ;;  %1950 = vmatprep.subr.bf16.mxu1 %v2280_v38 }
  0xfa   :  { %1869 = vmatpush1.bf16.msra.mxu0 %v2277_v43  ;;  %1951 = vmatpush1.bf16.msra.mxu1 %v2279_v44  ;;  %v316_v43 = vsub.s32 4, %v2468_v47  ;;  %v324_v44 = vsub.s32 6, %v2468_v47 }
  0xfb   :  { %1870 = vmatprep.subr.bf16.mxu0 %v2286_v45  ;;  %1952 = vmatprep.subr.bf16.mxu1 %v2288_v46  ;;  %v320_v45 = vsub.s32 5, %v2468_v47  ;;  %v328_v46 = vsub.s32 7, %v2468_v47 }
  0xfe   :  { %1871 = vmatpush1.bf16.msra.mxu0 %v2285_v52  ;;  %1953 = vmatpush1.bf16.msra.mxu1 %v2287_v53 }
  0xff   :  { %1872 = vmatprep.subr.bf16.mxu0 %v2294_v54  ;;  %1954 = vmatprep.subr.bf16.mxu1 %v2296_v55 }
 0x102   :  { %1873 = vmatpush1.bf16.msra.mxu0 %v2293_v61  ;;  %1955 = vmatpush1.bf16.msra.mxu1 %v2295_v62 }
 0x103   :  { %1874 = vmatprep.subr.bf16.mxu0 %v2302_v4  ;;  %1956 = vmatprep.subr.bf16.mxu1 %v2304_v63 }
 0x106   :  { %1875 = vmatpush1.bf16.msra.mxu0 %v2301_v5  ;;  %1957 = vmatpush1.bf16.msra.mxu1 %v2303_v31  ;;  %v2522_v5 = vsub.s32 2, %v2468_v47 }
 0x107   :  { %1876 = vmatprep.subr.bf16.mxu0 %v2310_v6  ;;  %1958 = vmatprep.subr.bf16.mxu1 %v2312_v7  ;;  %v304_v7 = vsub.s32 1, %v2468_v47 }
 0x10a   :  { %1877 = vmatpush1.bf16.msra.mxu0 %v2309_v12  ;;  %1959 = vmatpush1.bf16.msra.mxu1 %v2311_v13 }
 0x10b   :  { %1878 = vmatprep.subr.bf16.mxu0 %v2318_v14  ;;  %1960 = vmatprep.subr.bf16.mxu1 %v2320_v15 }
 0x10e   :  { %1879 = vmatpush1.bf16.msra.mxu0 %v2317_v20  ;;  %1961 = vmatpush1.bf16.msra.mxu1 %v2319_v21 }
 0x10f   :  { %1880 = vmatprep.subr.bf16.mxu0 %v2326_v23  ;;  %1962 = vmatprep.subr.bf16.mxu1 %v2328_v24 }
 0x112   :  { %1881 = vmatpush1.bf16.msra.mxu0 %v2325_v29  ;;  %1963 = vmatpush1.bf16.msra.mxu1 %v2327_v30  ;;  %v2003_v29 = vld [vmem:[%s2542_s1] sm:$0xf] }
 0x113   :  { %1882 = vmatprep.subr.bf16.mxu0 %v2334_v60  ;;  %1964 = vmatprep.subr.bf16.mxu1 %v2336_v32  ;;  %v2029_v32 = vld [vmem:[%s2545_s4] sm:$0xf] }
 0x116   :  { %1883 = vmatpush1.bf16.msra.mxu0 %v2333_v33  ;;  %1965 = vmatpush1.bf16.msra.mxu1 %v2335_v34  ;;  %v2008_v34 = vrot.slane %v2003_v29, %v2519_v0 }
 0x119   :  { %1885 = vmatmul.mubr.bf16.vlgmr.msra.gmra.mrb[4].mxu0 %v2499_v57  ;;  %1967 = vmatmul.mubr.bf16.vlgmr.msra.gmra.mrb[4].mxu1 %v2499_v57  ;;  %v296_v57 = vld [vmem:[%s2544_s3] sm:$0xff] }
 0x11a   :  { %v317_v48 = vrot.slane %v296_v57, %v316_v43  ;;  %v325_v49 = vrot.slane %v296_v57, %v324_v44  ;;  %v321_v50 = vrot.slane %v296_v57, %v320_v45  ;;  %v329_v51 = vrot.slane %v296_v57, %v328_v46 }
 0x11b   :  { %v301_v12 = vrot.slane %v296_v57, %v2519_v0  ;;  %v309_v13 = vrot.slane %v296_v57, %v2522_v5  ;;  %v305_v14 = vrot.slane %v296_v57, %v304_v7  ;;  %v313_v15 = vrot.slane %v296_v57, %v312_v10 }
 0x11c   :  { %v2020_v43 = vrot.slane %v2003_v29, %v312_v10  ;;  %v2038_v57 = vrot.slane %v2029_v32, %v304_v7 }
 0x16c   :  { %v1722_v35 = vpop.f32.mrb[0].mxu0  ;;  %v1804_v36 = vpop.f32.mrb[0].mxu1 }
 0x16d   :  { %v1724_v37 = vpop.f32.mrb[1].mxu0  ;;  %v1806_v38 = vpop.f32.mrb[1].mxu1  ;;  %v2338_v16 = vadd.f32 %v1722_v35, %v301_v12  ;;  %v2340_v17 = vadd.f32 %v1804_v36, %v309_v13  ;;  %v2016_v36 = vrot.slane %v2003_v29, %v2522_v5 }
 0x16e   :  { %v1726_v39 = vpop.f32.mrb[2].mxu0  ;;  %v1808_v40 = vpop.f32.mrb[2].mxu1  ;;  %v2339_v18 = vadd.f32 %v1724_v37, %v305_v14  ;;  %v2341_v19 = vadd.f32 %v1806_v38, %v313_v15 }
 0x16f   :  { %v1727_v41 = vpop.f32.mrb[3].mxu0  ;;  %v1809_v42 = vpop.f32.mrb[3].mxu1  ;;  %v2012_v39 = vrot.slane %v2003_v29, %v304_v7  ;;  %v2034_v40 = vrot.slane %v2029_v32, %v2519_v0 }
 0x1ec   :  { %v1886_v52 = vpop.f32.mrb[4].mxu0  ;;  %v1968_v54 = vpop.f32.mrb[4].mxu1 }
 0x1ed   :  { %v2342_v53 = vadd.f32 %v1886_v52, %v317_v48  ;;  %v1888_v55 = vpop.f32.mrb[5].mxu0  ;;  %v2344_v56 = vadd.f32 %v1968_v54, %v325_v49  ;;  %v1970_v59 = vpop.f32.mrb[5].mxu1  ;;  %v2042_v48 = vrot.slane %v2029_v32, %v2522_v5  ;;  %v2046_v52 = vrot.slane %v2029_v32, %v312_v10 }
 0x1ee   :  { %v2343_v58 = vadd.f32 %v1888_v55, %v321_v50  ;;  %v1890_v22 = vpop.f32.mrb[6].mxu0  ;;  %v2345_v62 = vadd.f32 %v1970_v59, %v329_v51  ;;  %v1972_v4 = vpop.f32.mrb[6].mxu1 }
 0x1ef   :  { %v1979_v61 = vsub.f32 0.0, %v2342_v53  ;;  %v1891_v63 = vpop.f32.mrb[7].mxu0  ;;  %v1981_v1 = vsub.f32 0.0, %v2344_v56  ;;  %v1973_v3 = vpop.f32.mrb[7].mxu1 }
 0x1f0   :  { %v1980_v2 = vsub.f32 0.0, %v2343_v58  ;;  %v1982_v6 = vsub.f32 0.0, %v2345_v62 }
 0x1f1   :  { %v1983_v31 = vmul.f32 1.442695, %v1979_v61  ;;  %v1987_v8 = vmul.f32 1.442695, %v1981_v1  ;;  %v2337_v1 = vld [vmem:[#allocation2] ss:$0 sm:$0xff] }
 0x1f2   :  { %v1985_v9 = vmul.f32 1.442695, %v1980_v2  ;;  %v1989_v11 = vmul.f32 1.442695, %v1982_v6 }
 0x1f3   :  { %2366 = vpow2.f32 %v1983_v31 }
 0x1f4   :  { %2368 = vpow2.f32 %v1987_v8 }
 0x1f5   :  { %2370 = vpow2.f32 %v1985_v9 }
 0x1f6   :  { %2372 = vpow2.f32 %v1989_v11 }
 0x1f7   :  { %2374 = vtanh.f32 %v2338_v16 }
 0x1f8   :  { %2376 = vtanh.f32 %v2340_v17 }
 0x1f9   :  { %2378 = vtanh.f32 %v2339_v18 }
 0x1fa   :  { %2380 = vtanh.f32 %v2341_v19 }
 0x1fd   :  { %v2367_v20 = vpop.eup %2366 }
 0x1fe   :  { %v2369_v21 = vpop.eup %2368  ;;  %v1991_v47 = vadd.f32 1.0, %v2367_v20 }
 0x1ff   :  { %v2371_v23 = vpop.eup %2370  ;;  %v1993_v24 = vadd.f32 1.0, %v2369_v21 }
 0x200   :  { %v2373_v25 = vpop.eup %2372  ;;  %2382 = vrcp.f32 %v1991_v47  ;;  %v1992_v26 = vadd.f32 1.0, %v2371_v23 }
 0x201   :  { %2384 = vrcp.f32 %v1993_v24  ;;  %v1994_v27 = vadd.f32 1.0, %v2373_v25  ;;  %v2375_v28 = vpop.eup %2374 }
 0x202   :  { %2386 = vrcp.f32 %v1992_v26  ;;  %v2377_v30 = vpop.eup %2376 }
 0x203   :  { %2388 = vrcp.f32 %v1994_v27  ;;  %v2379_v60 = vpop.eup %2378 }
 0x204   :  { %v2381_v33 = vpop.eup %2380 }
 0x20a   :  { %v2383_v35 = vpop.eup %2382 }
 0x20b   :  { %v2385_v37 = vpop.eup %2384  ;;  %v1999_v38 = vmul.f32 %v2383_v35, %v2375_v28 }
 0x20c   :  { %v2387_v41 = vpop.eup %2386  ;;  %v2001_v42 = vmul.f32 %v2385_v37, %v2377_v30 }
 0x20d   :  { %v2389_v44 = vpop.eup %2388  ;;  %v2000_v45 = vmul.f32 %v2387_v41, %v2379_v60  ;;  %v2025_v46 = vadd.f32 %v2008_v34, %v1999_v38 }
 0x20e   :  { %v2002_v49 = vmul.f32 %v2389_v44, %v2381_v33  ;;  %v2027_v50 = vadd.f32 %v2016_v36, %v2001_v42 }
 0x20f   :  { %v2026_v51 = vadd.f32 %v2012_v39, %v2000_v45  ;;  %v2051_v53 = vmul.f32 %v2034_v40, %v2025_v46 }
 0x210   :  { %v2028_v54 = vadd.f32 %v2020_v43, %v2002_v49  ;;  %v2053_v56 = vmul.f32 %v2042_v48, %v2027_v50 }
 0x211   :  { %v2052_v55 = vmul.f32 %v2038_v57, %v2026_v51  ;;  %v2056_v58 = vsel %vm2055_vm0, %v2051_v53, 0.0 }
 0x212   :  { %v2054_v59 = vmul.f32 %v2046_v52, %v2028_v54  ;;  %v2059_v62 = vsel %vm2055_vm0, %v2053_v56, 0.0 }
 0x213   :  { %v2057_v22 = vsel %vm2055_vm0, %v2052_v55, 0.0 }
 0x214   :  { %v2058_v61 = vadd.f32 %v2057_v22, %v2056_v58  ;;  %v2061_v63 = vsel %vm2055_vm0, %v2054_v59, 0.0 }
 0x216   :  { %v2060_v4 = vadd.f32 %v2059_v62, %v2058_v61 }
 0x218   :  { %v2062_v0 = vadd.f32 %v2061_v63, %v2060_v4 }
 0x21a   :  { %2063 = vadd.xlane.f32.xlu0 %v2062_v0 }
 0x2a7   :  { %v2064_v2 = vpop.xlane.xlu0 %2063 }
 0x2a8   :  { %v2072_v3 = vadd.f32 %v2337_v1, %v2064_v2 }
 0x2aa   :  { %2074 = vst.msk [vmem:[%s2547_s6] sm:$0x3] %vm2073_vm1, %v2072_v3 }
 0x2ab   :  { %2079 = vsyncpa [#allocation4], 1 }

</bundles_post_ra>
